<compile_context>
chip_gen: v5e
topology: v5e:2x2
jax: 0.10.0
libtpu: 0.0.40
codegen_flags: <defaults>
</compile_context>

<pallas_src>
import functools
import math

import jax
import jax.numpy as jnp
from jax.experimental import pallas as pl
from jax.experimental.pallas import tpu as pltpu

# ---- model hyper-parameters (small, synthetic) -------------------------------
PATCH = 8        # patch size
C_IN = 3         # RGB
HIDDEN = 32      # ViT hidden dim D
MLP_HIDDEN = 64  # MLP expansion (2x)
EMBED = 64       # output embedding dim E

TARGET_ROWS = 2048      # ~activation rows per grid step (amortize step overhead)
ATTN_CHUNK_ROWS = 512   # dense masked-attention slab rows per chunk

# rows of the packed per-channel vector array (f32, shape (8, HIDDEN))
_LN1G, _LN1B, _LN2G, _LN2B, _LNFG, _LNFB, _BO, _B2 = range(8)


def _layernorm(x, g, b, eps=1e-5):
    mu = jnp.mean(x, axis=-1, keepdims=True)
    var = jnp.mean((x - mu) ** 2, axis=-1, keepdims=True)
    return (x - mu) * jax.lax.rsqrt(var + eps) * g + b


def _gelu(x):
    # tanh-approx GELU (EUP-friendly)
    # TODO(synk): PyTorch's default GELU is the exact erf form; swap if real
    # MAWS weights are substituted.
    return 0.5 * x * (1.0 + jnp.tanh(0.7978845608028654 * (x + 0.044715 * x * x * x)))


def vit_encode_kernel(
    rows_ref,                                  # (TB*P, Dp)   bf16  patch rows
    wp_ref,                                    # (Dp, D)      bf16
    posb_ref,                                  # (TB*P, D)    f32   pre-tiled pos+bias
    vecs_ref,                                  # (8, D)       f32   packed LN/bias vecs
    wqkv_ref,                                  # (D, 3D)      bf16  fused QKV
    bqkv_ref,                                  # (1, 3D)      f32
    wo_ref,                                    # (D, D)       bf16
    w1_ref,                                    # (D, M)       bf16
    b1_ref,                                    # (1, M)       f32
    w2_ref,                                    # (M, D)       bf16
    wproj_ref,                                 # (D, E)       bf16
    bproj_ref,                                 # (1, E)       f32
    pool_ref,                                  # (TB, TB*P)   bf16  mean-pool matrix
    abias_ref,                                 # (CH, CH)     f32   block-diag mask bias
    out_ref,                                   # (TB, E)      bf16
    *,
    chunk_rows,
):
    f32 = jnp.float32
    bf16 = jnp.bfloat16
    R, _ = rows_ref.shape
    D = wp_ref.shape[1]
    scale = 1.0 / math.sqrt(D)

    # --- patch embedding (bf16 MXU, f32 acc) + pre-tiled positional emb/bias
    x = jnp.dot(rows_ref[...], wp_ref[...], preferred_element_type=f32)
    x = x + posb_ref[...]                                              # (R, D) f32

    # --- attention block (single head, block-diagonal over images)
    xn = _layernorm(x, vecs_ref[_LN1G:_LN1G + 1, :], vecs_ref[_LN1B:_LN1B + 1, :])
    qkv = jnp.dot(xn.astype(bf16), wqkv_ref[...], preferred_element_type=f32)
    qkv = qkv + bqkv_ref[...]
    q = qkv[:, :D].astype(bf16)
    k = qkv[:, D:2 * D].astype(bf16)
    v = qkv[:, 2 * D:3 * D].astype(bf16)

    n_chunks = R // chunk_rows
    att_chunks = []
    for c in range(n_chunks):                  # short, static loop (<= 4 chunks)
        sl = slice(c * chunk_rows, (c + 1) * chunk_rows)
        # scores: contract last dims (no explicit transpose); lane-dense (CH, CH)
        s = jax.lax.dot_general(q[sl], k[sl], (((1,), (1,)), ((), ())),
                                preferred_element_type=f32) * scale
        s = s + abias_ref[...]                 # 0 on own image, -1e9 elsewhere
        s = s - jnp.max(s, axis=-1, keepdims=True)
        e = jnp.exp(s)
        p = e * pl.reciprocal(jnp.sum(e, axis=-1, keepdims=True), approx=True)
        att_chunks.append(jnp.dot(p.astype(bf16), v[sl],
                                  preferred_element_type=f32))
    att = att_chunks[0] if n_chunks == 1 else jnp.concatenate(att_chunks, axis=0)
    att = jnp.dot(att.astype(bf16), wo_ref[...],
                  preferred_element_type=f32) + vecs_ref[_BO:_BO + 1, :]
    x = x + att

    # --- MLP block
    xn = _layernorm(x, vecs_ref[_LN2G:_LN2G + 1, :], vecs_ref[_LN2B:_LN2B + 1, :])
    h = jnp.dot(xn.astype(bf16), w1_ref[...], preferred_element_type=f32) + b1_ref[...]
    h = _gelu(h)
    h = jnp.dot(h.astype(bf16), w2_ref[...],
                preferred_element_type=f32) + vecs_ref[_B2:_B2 + 1, :]
    x = x + h

    # --- final LN, matmul-based mean pool over patches, output projection
    xn = _layernorm(x, vecs_ref[_LNFG:_LNFG + 1, :], vecs_ref[_LNFB:_LNFB + 1, :])
    pooled = jnp.dot(pool_ref[...], xn.astype(bf16),
                     preferred_element_type=f32)                        # (TB, D)
    out = jnp.dot(pooled.astype(bf16), wproj_ref[...],
                  preferred_element_type=f32) + bproj_ref[...]
    out_ref[...] = out.astype(out_ref.dtype)                            # (TB, E)


def init_params(key, h, w):
    num_patches = (h // PATCH) * (w // PATCH)
    patch_dim = C_IN * PATCH * PATCH
    ks = jax.random.split(key, 7)

    def wn(k, shape):
        return (0.02 * jax.random.normal(k, shape, jnp.float32)).astype(jnp.bfloat16)

    # packed f32 per-channel vectors: LN gains -> 1, biases -> 0
    vecs = jnp.zeros((8, HIDDEN), jnp.float32)
    vecs = vecs.at[jnp.array([_LN1G, _LN2G, _LNFG])].set(1.0)

    return {
        "wp": wn(ks[0], (patch_dim, HIDDEN)),
        "wqkv": wn(ks[1], (HIDDEN, 3 * HIDDEN)),
        "wo": wn(ks[2], (HIDDEN, HIDDEN)),
        "w1": wn(ks[3], (HIDDEN, MLP_HIDDEN)),
        "w2": wn(ks[4], (MLP_HIDDEN, HIDDEN)),
        "wproj": wn(ks[5], (HIDDEN, EMBED)),
        # positional embedding with the (zero-init) patch-embed bias folded in
        "posb": 0.02 * jax.random.normal(ks[6], (num_patches, HIDDEN), jnp.float32),
        "vecs": vecs,
        "bqkv": jnp.zeros((1, 3 * HIDDEN), jnp.float32),
        "b1": jnp.zeros((1, MLP_HIDDEN), jnp.float32),
        "bproj": jnp.zeros((1, EMBED), jnp.float32),
    }


def wrap_model_forward(video, params, *, tb=None):
    """Pallas equivalent of WrapModel.forward({'video': video})."""
    # imgs = x['video'].half()  -> bf16 on TPU
    imgs = video.astype(jnp.bfloat16)
    # imgs = imgs.view(-1, 3, H, W)
    h, w = imgs.shape[-2], imgs.shape[-1]
    imgs = imgs.reshape(-1, C_IN, h, w)                   # (N, 3, H, W)  NCHW
    n = imgs.shape[0]

    hp, wp_ = h // PATCH, w // PATCH
    num_patches = hp * wp_
    patch_dim = C_IN * PATCH * PATCH

    # glue: patchify NCHW -> 2-D sublane-dense rows (n*P, 3*PATCH*PATCH)
    x = imgs.reshape(n, C_IN, hp, PATCH, wp_, PATCH)
    x = x.transpose(0, 2, 4, 1, 3, 5).reshape(n * num_patches, patch_dim)

    # ---- block sizing -----------------------------------------------------
    if tb is None:
        tb = max(1, min(n, TARGET_ROWS // num_patches))
    imgs_per_chunk = max(1, ATTN_CHUNK_ROWS // num_patches)
    if tb > imgs_per_chunk:
        tb = max(imgs_per_chunk, (tb // imgs_per_chunk) * imgs_per_chunk)
    while (tb * num_patches) % 16:            # bf16 sublane alignment of row block
        tb += 1
    if tb > imgs_per_chunk and tb % imgs_per_chunk == 0:
        chunk_rows = imgs_per_chunk * num_patches
    else:
        chunk_rows = tb * num_patches

    n_blocks = pl.cdiv(n, tb)
    n_pad = n_blocks * tb
    if n_pad != n:
        x = jnp.pad(x, ((0, (n_pad - n) * num_patches), (0, 0)))

    # ---- host-prepared per-call constants (fetched once; constant index map)
    posb_tiled = jnp.tile(params["posb"], (tb, 1))                       # (tb*P, D) f32
    pool_mat = (jnp.repeat(jnp.eye(tb, dtype=jnp.float32), num_patches, axis=1)
                / num_patches).astype(jnp.bfloat16)                      # (tb, tb*P)
    rid = jnp.arange(chunk_rows) // num_patches
    abias = jnp.where(rid[:, None] == rid[None, :], 0.0, -1e9).astype(jnp.float32)

    param_list = [
        params["wp"], posb_tiled, params["vecs"], params["wqkv"], params["bqkv"],
        params["wo"], params["w1"], params["b1"], params["w2"],
        params["wproj"], params["bproj"], pool_mat, abias,
    ]
    in_specs = [pl.BlockSpec((tb * num_patches, patch_dim), lambda i: (i, 0))]
    for prm in param_list:
        in_specs.append(pl.BlockSpec(prm.shape, lambda i: (0, 0)))

    kernel = functools.partial(vit_encode_kernel, chunk_rows=chunk_rows)

    out = pl.pallas_call(
        kernel,
        out_shape=jax.ShapeDtypeStruct((n_pad, EMBED), jnp.bfloat16),
        grid_spec=pltpu.PrefetchScalarGridSpec(
            num_scalar_prefetch=0,
            grid=(n_blocks,),
            in_specs=in_specs,
            out_specs=pl.BlockSpec((tb, EMBED), lambda i: (i, 0)),
        ),
        compiler_params=pltpu.CompilerParams(
            dimension_semantics=("parallel",),
            vmem_limit_bytes=48 * 1024 * 1024),
    )(x, *param_list)
    return out[:n]


if __name__ == "__main__":
    key = jax.random.PRNGKey(0)
    k_vid, k_par = jax.random.split(key)
    # x['video']: (B, T, 3, H, W) -> flattened to (B*T, 3, H, W) inside forward
    B, T, H, W = 2, 2, 16, 16
    video = jax.random.normal(k_vid, (B, T, C_IN, H, W), dtype=jnp.float32)
    params = init_params(k_par, H, W)

    out = wrap_model_forward(video, params)
    jax.block_until_ready(out)
    assert out.shape == (B * T, EMBED), out.shape
    # TODO(synk): the real MAWS `model.encode_images` weights/architecture are
    # external to this module; a synthetic single-block ViT stands in for it.
    print("KERNEL_OK")
</pallas_src>

<mosaic_0001>
module attributes {stable_mosaic.version = 11 : i64} {
  func.func @vit_encode_kernel(%arg0: i32, %arg1: memref<16x192xbf16, #tpu.memory_space<vmem>>, %arg2: memref<192x32xbf16, #tpu.memory_space<vmem>>, %arg3: memref<16x32xf32, #tpu.memory_space<vmem>>, %arg4: memref<8x32xf32, #tpu.memory_space<vmem>>, %arg5: memref<32x96xbf16, #tpu.memory_space<vmem>>, %arg6: memref<1x96xf32, #tpu.memory_space<vmem>>, %arg7: memref<32x32xbf16, #tpu.memory_space<vmem>>, %arg8: memref<32x64xbf16, #tpu.memory_space<vmem>>, %arg9: memref<1x64xf32, #tpu.memory_space<vmem>>, %arg10: memref<64x32xbf16, #tpu.memory_space<vmem>>, %arg11: memref<32x64xbf16, #tpu.memory_space<vmem>>, %arg12: memref<1x64xf32, #tpu.memory_space<vmem>>, %arg13: memref<4x16xbf16, #tpu.memory_space<vmem>>, %arg14: memref<16x16xf32, #tpu.memory_space<vmem>>, %arg15: memref<4x64xbf16, #tpu.memory_space<vmem>>) attributes {dimension_semantics = [#tpu.dimension_semantics<parallel>], iteration_bounds = array<i64: 1>, scalar_prefetch = 0 : i64, scratch_operands = 0 : i64, tpu.core_type = #tpu.core_type<tc>, window_params = [{transform_indices = @transform_0, window_bounds = array<i64: 16, 192>}, {pipeline_mode = #tpu.pipeline_mode<synchronous>, transform_indices = @transform_1, window_bounds = array<i64: 192, 32>}, {pipeline_mode = #tpu.pipeline_mode<synchronous>, transform_indices = @transform_2, window_bounds = array<i64: 16, 32>}, {pipeline_mode = #tpu.pipeline_mode<synchronous>, transform_indices = @transform_3, window_bounds = array<i64: 8, 32>}, {pipeline_mode = #tpu.pipeline_mode<synchronous>, transform_indices = @transform_4, window_bounds = array<i64: 32, 96>}, {pipeline_mode = #tpu.pipeline_mode<synchronous>, transform_indices = @transform_5, window_bounds = array<i64: 1, 96>}, {pipeline_mode = #tpu.pipeline_mode<synchronous>, transform_indices = @transform_6, window_bounds = array<i64: 32, 32>}, {pipeline_mode = #tpu.pipeline_mode<synchronous>, transform_indices = @transform_7, window_bounds = array<i64: 32, 64>}, {pipeline_mode = #tpu.pipeline_mode<synchronous>, transform_indices = @transform_8, window_bounds = array<i64: 1, 64>}, {pipeline_mode = #tpu.pipeline_mode<synchronous>, transform_indices = @transform_9, window_bounds = array<i64: 64, 32>}, {pipeline_mode = #tpu.pipeline_mode<synchronous>, transform_indices = @transform_10, window_bounds = array<i64: 32, 64>}, {pipeline_mode = #tpu.pipeline_mode<synchronous>, transform_indices = @transform_11, window_bounds = array<i64: 1, 64>}, {pipeline_mode = #tpu.pipeline_mode<synchronous>, transform_indices = @transform_12, window_bounds = array<i64: 4, 16>}, {pipeline_mode = #tpu.pipeline_mode<synchronous>, transform_indices = @transform_13, window_bounds = array<i64: 16, 16>}, {transform_indices = @transform_14, window_bounds = array<i64: 4, 64>}]} {
    %c0 = arith.constant 0 : index
    %c0_0 = arith.constant 0 : index
    %0 = vector.load %arg1[%c0, %c0_0] : memref<16x192xbf16, #tpu.memory_space<vmem>>, vector<16x192xbf16>
    %c0_1 = arith.constant 0 : index
    %c0_2 = arith.constant 0 : index
    %1 = vector.load %arg2[%c0_1, %c0_2] : memref<192x32xbf16, #tpu.memory_space<vmem>>, vector<192x32xbf16>
    %cst = arith.constant dense<0.000000e+00> : vector<16x32xf32>
    %2 = tpu.matmul %0, %1, %cst {dimension_numbers = #tpu.dot_dimension_numbers<[1], [0], [0], [1], [0, 0, 1, 1], [], []>} : vector<16x192xbf16>, vector<192x32xbf16>, vector<16x32xf32> -> vector<16x32xf32>
    %c0_3 = arith.constant 0 : index
    %c0_4 = arith.constant 0 : index
    %3 = vector.load %arg3[%c0_3, %c0_4] : memref<16x32xf32, #tpu.memory_space<vmem>>, vector<16x32xf32>
    %4 = arith.addf %2, %3 : vector<16x32xf32>
    %c0_5 = arith.constant 0 : index
    %c0_6 = arith.constant 0 : index
    %5 = vector.load %arg4[%c0_5, %c0_6] : memref<8x32xf32, #tpu.memory_space<vmem>>, vector<1x32xf32>
    %c1 = arith.constant 1 : index
    %c0_7 = arith.constant 0 : index
    %6 = vector.load %arg4[%c1, %c0_7] : memref<8x32xf32, #tpu.memory_space<vmem>>, vector<1x32xf32>
    %cst_8 = arith.constant dense<0.000000e+00> : vector<16xf32>
    %7 = vector.multi_reduction <add>, %4, %cst_8 [1] : vector<16x32xf32> to vector<16xf32>
    %8 = vector.shape_cast %7 : vector<16xf32> to vector<16x1xf32>
    %cst_9 = arith.constant 3.200000e+01 : f32
    %9 = vector.broadcast %cst_9 : f32 to vector<16x1xf32>
    %10 = arith.divf %8, %9 : vector<16x1xf32>
    %11 = vector.broadcast %10 : vector<16x1xf32> to vector<16x32xf32>
    %12 = arith.subf %4, %11 : vector<16x32xf32>
    %13 = arith.mulf %12, %12 : vector<16x32xf32>
    %cst_10 = arith.constant dense<0.000000e+00> : vector<16xf32>
    %14 = vector.multi_reduction <add>, %13, %cst_10 [1] : vector<16x32xf32> to vector<16xf32>
    %15 = vector.shape_cast %14 : vector<16xf32> to vector<16x1xf32>
    %cst_11 = arith.constant 3.200000e+01 : f32
    %16 = vector.broadcast %cst_11 : f32 to vector<16x1xf32>
    %17 = arith.divf %15, %16 : vector<16x1xf32>
    %18 = vector.broadcast %10 : vector<16x1xf32> to vector<16x32xf32>
    %19 = arith.subf %4, %18 : vector<16x32xf32>
    %cst_12 = arith.constant 9.99999974E-6 : f32
    %20 = vector.broadcast %cst_12 : f32 to vector<16x1xf32>
    %21 = arith.addf %17, %20 : vector<16x1xf32>
    %22 = math.rsqrt %21 : vector<16x1xf32>
    %23 = vector.broadcast %22 : vector<16x1xf32> to vector<16x32xf32>
    %24 = arith.mulf %19, %23 : vector<16x32xf32>
    %25 = vector.broadcast %5 : vector<1x32xf32> to vector<16x32xf32>
    %26 = arith.mulf %24, %25 : vector<16x32xf32>
    %27 = vector.broadcast %6 : vector<1x32xf32> to vector<16x32xf32>
    %28 = arith.addf %26, %27 : vector<16x32xf32>
    %29 = arith.truncf %28 : vector<16x32xf32> to vector<16x32xbf16>
    %c0_13 = arith.constant 0 : index
    %c0_14 = arith.constant 0 : index
    %30 = vector.load %arg5[%c0_13, %c0_14] : memref<32x96xbf16, #tpu.memory_space<vmem>>, vector<32x96xbf16>
    %cst_15 = arith.constant dense<0.000000e+00> : vector<16x96xf32>
    %31 = tpu.matmul %29, %30, %cst_15 {dimension_numbers = #tpu.dot_dimension_numbers<[1], [0], [0], [1], [0, 0, 1, 1], [], []>} : vector<16x32xbf16>, vector<32x96xbf16>, vector<16x96xf32> -> vector<16x96xf32>
    %c0_16 = arith.constant 0 : index
    %c0_17 = arith.constant 0 : index
    %32 = vector.load %arg6[%c0_16, %c0_17] : memref<1x96xf32, #tpu.memory_space<vmem>>, vector<1x96xf32>
    %33 = vector.broadcast %32 : vector<1x96xf32> to vector<16x96xf32>
    %34 = arith.addf %31, %33 : vector<16x96xf32>
    %35 = vector.extract_strided_slice %34 {offsets = [0, 0], sizes = [16, 32], strides = [1, 1]} : vector<16x96xf32> to vector<16x32xf32>
    %36 = arith.truncf %35 : vector<16x32xf32> to vector<16x32xbf16>
    %37 = vector.extract_strided_slice %34 {offsets = [0, 32], sizes = [16, 32], strides = [1, 1]} : vector<16x96xf32> to vector<16x32xf32>
    %38 = arith.truncf %37 : vector<16x32xf32> to vector<16x32xbf16>
    %39 = vector.extract_strided_slice %34 {offsets = [0, 64], sizes = [16, 32], strides = [1, 1]} : vector<16x96xf32> to vector<16x32xf32>
    %40 = arith.truncf %39 : vector<16x32xf32> to vector<16x32xbf16>
    %cst_18 = arith.constant dense<0.000000e+00> : vector<16x16xf32>
    %41 = tpu.matmul %36, %38, %cst_18 {dimension_numbers = #tpu.dot_dimension_numbers<[1], [1], [0], [0], [0, 0, 1, 0], [], []>} : vector<16x32xbf16>, vector<16x32xbf16>, vector<16x16xf32> -> vector<16x16xf32>
    %cst_19 = arith.constant 0.176776692 : f32
    %42 = vector.broadcast %cst_19 : f32 to vector<16x16xf32>
    %43 = arith.mulf %41, %42 : vector<16x16xf32>
    %c0_20 = arith.constant 0 : index
    %c0_21 = arith.constant 0 : index
    %44 = vector.load %arg14[%c0_20, %c0_21] : memref<16x16xf32, #tpu.memory_space<vmem>>, vector<16x16xf32>
    %45 = arith.addf %43, %44 : vector<16x16xf32>
    %cst_22 = arith.constant dense<0xFF800000> : vector<16xf32>
    %46 = vector.multi_reduction <maximumf>, %45, %cst_22 [1] : vector<16x16xf32> to vector<16xf32>
    %47 = vector.shape_cast %46 : vector<16xf32> to vector<16x1xf32>
    %48 = vector.broadcast %47 : vector<16x1xf32> to vector<16x16xf32>
    %49 = arith.subf %45, %48 : vector<16x16xf32>
    %50 = math.exp %49 : vector<16x16xf32>
    %cst_23 = arith.constant dense<0.000000e+00> : vector<16xf32>
    %51 = vector.multi_reduction <add>, %50, %cst_23 [1] : vector<16x16xf32> to vector<16xf32>
    %52 = vector.shape_cast %51 : vector<16xf32> to vector<16x1xf32>
    %53 = tpu.reciprocal %52 {approx = true} : vector<16x1xf32> -> vector<16x1xf32>
    %54 = vector.broadcast %53 : vector<16x1xf32> to vector<16x16xf32>
    %55 = arith.mulf %50, %54 : vector<16x16xf32>
    %56 = arith.truncf %55 : vector<16x16xf32> to vector<16x16xbf16>
    %cst_24 = arith.constant dense<0.000000e+00> : vector<16x32xf32>
    %57 = tpu.matmul %56, %40, %cst_24 {dimension_numbers = #tpu.dot_dimension_numbers<[1], [0], [0], [1], [0, 0, 1, 1], [], []>} : vector<16x16xbf16>, vector<16x32xbf16>, vector<16x32xf32> -> vector<16x32xf32>
    %58 = arith.truncf %57 : vector<16x32xf32> to vector<16x32xbf16>
    %c0_25 = arith.constant 0 : index
    %c0_26 = arith.constant 0 : index
    %59 = vector.load %arg7[%c0_25, %c0_26] : memref<32x32xbf16, #tpu.memory_space<vmem>>, vector<32x32xbf16>
    %cst_27 = arith.constant dense<0.000000e+00> : vector<16x32xf32>
    %60 = tpu.matmul %58, %59, %cst_27 {dimension_numbers = #tpu.dot_dimension_numbers<[1], [0], [0], [1], [0, 0, 1, 1], [], []>} : vector<16x32xbf16>, vector<32x32xbf16>, vector<16x32xf32> -> vector<16x32xf32>
    %c6 = arith.constant 6 : index
    %c0_28 = arith.constant 0 : index
    %61 = vector.load %arg4[%c6, %c0_28] : memref<8x32xf32, #tpu.memory_space<vmem>>, vector<1x32xf32>
    %62 = vector.broadcast %61 : vector<1x32xf32> to vector<16x32xf32>
    %63 = arith.addf %60, %62 : vector<16x32xf32>
    %64 = arith.addf %4, %63 : vector<16x32xf32>
    %c2 = arith.constant 2 : index
    %c0_29 = arith.constant 0 : index
    %65 = vector.load %arg4[%c2, %c0_29] : memref<8x32xf32, #tpu.memory_space<vmem>>, vector<1x32xf32>
    %c3 = arith.constant 3 : index
    %c0_30 = arith.constant 0 : index
    %66 = vector.load %arg4[%c3, %c0_30] : memref<8x32xf32, #tpu.memory_space<vmem>>, vector<1x32xf32>
    %cst_31 = arith.constant dense<0.000000e+00> : vector<16xf32>
    %67 = vector.multi_reduction <add>, %64, %cst_31 [1] : vector<16x32xf32> to vector<16xf32>
    %68 = vector.shape_cast %67 : vector<16xf32> to vector<16x1xf32>
    %cst_32 = arith.constant 3.200000e+01 : f32
    %69 = vector.broadcast %cst_32 : f32 to vector<16x1xf32>
    %70 = arith.divf %68, %69 : vector<16x1xf32>
    %71 = vector.broadcast %70 : vector<16x1xf32> to vector<16x32xf32>
    %72 = arith.subf %64, %71 : vector<16x32xf32>
    %73 = arith.mulf %72, %72 : vector<16x32xf32>
    %cst_33 = arith.constant dense<0.000000e+00> : vector<16xf32>
    %74 = vector.multi_reduction <add>, %73, %cst_33 [1] : vector<16x32xf32> to vector<16xf32>
    %75 = vector.shape_cast %74 : vector<16xf32> to vector<16x1xf32>
    %cst_34 = arith.constant 3.200000e+01 : f32
    %76 = vector.broadcast %cst_34 : f32 to vector<16x1xf32>
    %77 = arith.divf %75, %76 : vector<16x1xf32>
    %78 = vector.broadcast %70 : vector<16x1xf32> to vector<16x32xf32>
    %79 = arith.subf %64, %78 : vector<16x32xf32>
    %cst_35 = arith.constant 9.99999974E-6 : f32
    %80 = vector.broadcast %cst_35 : f32 to vector<16x1xf32>
    %81 = arith.addf %77, %80 : vector<16x1xf32>
    %82 = math.rsqrt %81 : vector<16x1xf32>
    %83 = vector.broadcast %82 : vector<16x1xf32> to vector<16x32xf32>
    %84 = arith.mulf %79, %83 : vector<16x32xf32>
    %85 = vector.broadcast %65 : vector<1x32xf32> to vector<16x32xf32>
    %86 = arith.mulf %84, %85 : vector<16x32xf32>
    %87 = vector.broadcast %66 : vector<1x32xf32> to vector<16x32xf32>
    %88 = arith.addf %86, %87 : vector<16x32xf32>
    %89 = arith.truncf %88 : vector<16x32xf32> to vector<16x32xbf16>
    %c0_36 = arith.constant 0 : index
    %c0_37 = arith.constant 0 : index
    %90 = vector.load %arg8[%c0_36, %c0_37] : memref<32x64xbf16, #tpu.memory_space<vmem>>, vector<32x64xbf16>
    %cst_38 = arith.constant dense<0.000000e+00> : vector<16x64xf32>
    %91 = tpu.matmul %89, %90, %cst_38 {dimension_numbers = #tpu.dot_dimension_numbers<[1], [0], [0], [1], [0, 0, 1, 1], [], []>} : vector<16x32xbf16>, vector<32x64xbf16>, vector<16x64xf32> -> vector<16x64xf32>
    %c0_39 = arith.constant 0 : index
    %c0_40 = arith.constant 0 : index
    %92 = vector.load %arg9[%c0_39, %c0_40] : memref<1x64xf32, #tpu.memory_space<vmem>>, vector<1x64xf32>
    %93 = vector.broadcast %92 : vector<1x64xf32> to vector<16x64xf32>
    %94 = arith.addf %91, %93 : vector<16x64xf32>
    %cst_41 = arith.constant 5.000000e-01 : f32
    %95 = vector.broadcast %cst_41 : f32 to vector<16x64xf32>
    %96 = arith.mulf %95, %94 : vector<16x64xf32>
    %cst_42 = arith.constant 4.471500e-02 : f32
    %97 = vector.broadcast %cst_42 : f32 to vector<16x64xf32>
    %98 = arith.mulf %97, %94 : vector<16x64xf32>
    %99 = arith.mulf %98, %94 : vector<16x64xf32>
    %100 = arith.mulf %99, %94 : vector<16x64xf32>
    %101 = arith.addf %94, %100 : vector<16x64xf32>
    %cst_43 = arith.constant 0.797884583 : f32
    %102 = vector.broadcast %cst_43 : f32 to vector<16x64xf32>
    %103 = arith.mulf %102, %101 : vector<16x64xf32>
    %104 = math.tanh %103 : vector<16x64xf32>
    %cst_44 = arith.constant 1.000000e+00 : f32
    %105 = vector.broadcast %cst_44 : f32 to vector<16x64xf32>
    %106 = arith.addf %105, %104 : vector<16x64xf32>
    %107 = arith.mulf %96, %106 : vector<16x64xf32>
    %108 = arith.truncf %107 : vector<16x64xf32> to vector<16x64xbf16>
    %c0_45 = arith.constant 0 : index
    %c0_46 = arith.constant 0 : index
    %109 = vector.load %arg10[%c0_45, %c0_46] : memref<64x32xbf16, #tpu.memory_space<vmem>>, vector<64x32xbf16>
    %cst_47 = arith.constant dense<0.000000e+00> : vector<16x32xf32>
    %110 = tpu.matmul %108, %109, %cst_47 {dimension_numbers = #tpu.dot_dimension_numbers<[1], [0], [0], [1], [0, 0, 1, 1], [], []>} : vector<16x64xbf16>, vector<64x32xbf16>, vector<16x32xf32> -> vector<16x32xf32>
    %c7 = arith.constant 7 : index
    %c0_48 = arith.constant 0 : index
    %111 = vector.load %arg4[%c7, %c0_48] : memref<8x32xf32, #tpu.memory_space<vmem>>, vector<1x32xf32>
    %112 = vector.broadcast %111 : vector<1x32xf32> to vector<16x32xf32>
    %113 = arith.addf %110, %112 : vector<16x32xf32>
    %114 = arith.addf %64, %113 : vector<16x32xf32>
    %c4 = arith.constant 4 : index
    %c0_49 = arith.constant 0 : index
    %115 = vector.load %arg4[%c4, %c0_49] : memref<8x32xf32, #tpu.memory_space<vmem>>, vector<1x32xf32>
    %c5 = arith.constant 5 : index
    %c0_50 = arith.constant 0 : index
    %116 = vector.load %arg4[%c5, %c0_50] : memref<8x32xf32, #tpu.memory_space<vmem>>, vector<1x32xf32>
    %cst_51 = arith.constant dense<0.000000e+00> : vector<16xf32>
    %117 = vector.multi_reduction <add>, %114, %cst_51 [1] : vector<16x32xf32> to vector<16xf32>
    %118 = vector.shape_cast %117 : vector<16xf32> to vector<16x1xf32>
    %cst_52 = arith.constant 3.200000e+01 : f32
    %119 = vector.broadcast %cst_52 : f32 to vector<16x1xf32>
    %120 = arith.divf %118, %119 : vector<16x1xf32>
    %121 = vector.broadcast %120 : vector<16x1xf32> to vector<16x32xf32>
    %122 = arith.subf %114, %121 : vector<16x32xf32>
    %123 = arith.mulf %122, %122 : vector<16x32xf32>
    %cst_53 = arith.constant dense<0.000000e+00> : vector<16xf32>
    %124 = vector.multi_reduction <add>, %123, %cst_53 [1] : vector<16x32xf32> to vector<16xf32>
    %125 = vector.shape_cast %124 : vector<16xf32> to vector<16x1xf32>
    %cst_54 = arith.constant 3.200000e+01 : f32
    %126 = vector.broadcast %cst_54 : f32 to vector<16x1xf32>
    %127 = arith.divf %125, %126 : vector<16x1xf32>
    %128 = vector.broadcast %120 : vector<16x1xf32> to vector<16x32xf32>
    %129 = arith.subf %114, %128 : vector<16x32xf32>
    %cst_55 = arith.constant 9.99999974E-6 : f32
    %130 = vector.broadcast %cst_55 : f32 to vector<16x1xf32>
    %131 = arith.addf %127, %130 : vector<16x1xf32>
    %132 = math.rsqrt %131 : vector<16x1xf32>
    %133 = vector.broadcast %132 : vector<16x1xf32> to vector<16x32xf32>
    %134 = arith.mulf %129, %133 : vector<16x32xf32>
    %135 = vector.broadcast %115 : vector<1x32xf32> to vector<16x32xf32>
    %136 = arith.mulf %134, %135 : vector<16x32xf32>
    %137 = vector.broadcast %116 : vector<1x32xf32> to vector<16x32xf32>
    %138 = arith.addf %136, %137 : vector<16x32xf32>
    %c0_56 = arith.constant 0 : index
    %c0_57 = arith.constant 0 : index
    %139 = vector.load %arg13[%c0_56, %c0_57] : memref<4x16xbf16, #tpu.memory_space<vmem>>, vector<4x16xbf16>
    %140 = arith.truncf %138 : vector<16x32xf32> to vector<16x32xbf16>
    %cst_58 = arith.constant dense<0.000000e+00> : vector<4x32xf32>
    %141 = tpu.matmul %139, %140, %cst_58 {dimension_numbers = #tpu.dot_dimension_numbers<[1], [0], [0], [1], [0, 0, 1, 1], [], []>} : vector<4x16xbf16>, vector<16x32xbf16>, vector<4x32xf32> -> vector<4x32xf32>
    %142 = arith.truncf %141 : vector<4x32xf32> to vector<4x32xbf16>
    %c0_59 = arith.constant 0 : index
    %c0_60 = arith.constant 0 : index
    %143 = vector.load %arg11[%c0_59, %c0_60] : memref<32x64xbf16, #tpu.memory_space<vmem>>, vector<32x64xbf16>
    %cst_61 = arith.constant dense<0.000000e+00> : vector<4x64xf32>
    %144 = tpu.matmul %142, %143, %cst_61 {dimension_numbers = #tpu.dot_dimension_numbers<[1], [0], [0], [1], [0, 0, 1, 1], [], []>} : vector<4x32xbf16>, vector<32x64xbf16>, vector<4x64xf32> -> vector<4x64xf32>
    %c0_62 = arith.constant 0 : index
    %c0_63 = arith.constant 0 : index
    %145 = vector.load %arg12[%c0_62, %c0_63] : memref<1x64xf32, #tpu.memory_space<vmem>>, vector<1x64xf32>
    %146 = vector.broadcast %145 : vector<1x64xf32> to vector<4x64xf32>
    %147 = arith.addf %144, %146 : vector<4x64xf32>
    %148 = arith.truncf %147 : vector<4x64xf32> to vector<4x64xbf16>
    %c0_64 = arith.constant 0 : index
    %c0_65 = arith.constant 0 : index
    %149 = vector.load %arg15[%c0_64, %c0_65] : memref<4x64xbf16, #tpu.memory_space<vmem>>, vector<4x64xbf16>
    tpu.vector_store %arg15[%c0_64, %c0_65], %148 {strides = array<i32>} : memref<4x64xbf16, #tpu.memory_space<vmem>>, vector<4x64xbf16>,
    return
  }
  func.func @transform_0(%arg0: i32) -> (i32, i32) {
    %c0_i32 = arith.constant 0 : i32
    %c0_i32_0 = arith.constant 0 : i32
    return %arg0, %c0_i32 : i32, i32
  }
  func.func @transform_1(%arg0: i32) -> (i32, i32) {
    %c0_i32 = arith.constant 0 : i32
    %c0_i32_0 = arith.constant 0 : i32
    %c0_i32_1 = arith.constant 0 : i32
    return %c0_i32, %c0_i32_0 : i32, i32
  }
  func.func @transform_2(%arg0: i32) -> (i32, i32) {
    %c0_i32 = arith.constant 0 : i32
    %c0_i32_0 = arith.constant 0 : i32
    %c0_i32_1 = arith.constant 0 : i32
    return %c0_i32, %c0_i32_0 : i32, i32
  }
  func.func @transform_3(%arg0: i32) -> (i32, i32) {
    %c0_i32 = arith.constant 0 : i32
    %c0_i32_0 = arith.constant 0 : i32
    %c0_i32_1 = arith.constant 0 : i32
    return %c0_i32, %c0_i32_0 : i32, i32
  }
  func.func @transform_4(%arg0: i32) -> (i32, i32) {
    %c0_i32 = arith.constant 0 : i32
    %c0_i32_0 = arith.constant 0 : i32
    %c0_i32_1 = arith.constant 0 : i32
    return %c0_i32, %c0_i32_0 : i32, i32
  }
  func.func @transform_5(%arg0: i32) -> (i32, i32) {
    %c0_i32 = arith.constant 0 : i32
    %c0_i32_0 = arith.constant 0 : i32
    %c0_i32_1 = arith.constant 0 : i32
    return %c0_i32, %c0_i32_0 : i32, i32
  }
  func.func @transform_6(%arg0: i32) -> (i32, i32) {
    %c0_i32 = arith.constant 0 : i32
    %c0_i32_0 = arith.constant 0 : i32
    %c0_i32_1 = arith.constant 0 : i32
    return %c0_i32, %c0_i32_0 : i32, i32
  }
  func.func @transform_7(%arg0: i32) -> (i32, i32) {
    %c0_i32 = arith.constant 0 : i32
    %c0_i32_0 = arith.constant 0 : i32
    %c0_i32_1 = arith.constant 0 : i32
    return %c0_i32, %c0_i32_0 : i32, i32
  }
  func.func @transform_8(%arg0: i32) -> (i32, i32) {
    %c0_i32 = arith.constant 0 : i32
    %c0_i32_0 = arith.constant 0 : i32
    %c0_i32_1 = arith.constant 0 : i32
    return %c0_i32, %c0_i32_0 : i32, i32
  }
  func.func @transform_9(%arg0: i32) -> (i32, i32) {
    %c0_i32 = arith.constant 0 : i32
    %c0_i32_0 = arith.constant 0 : i32
    %c0_i32_1 = arith.constant 0 : i32
    return %c0_i32, %c0_i32_0 : i32, i32
  }
  func.func @transform_10(%arg0: i32) -> (i32, i32) {
    %c0_i32 = arith.constant 0 : i32
    %c0_i32_0 = arith.constant 0 : i32
    %c0_i32_1 = arith.constant 0 : i32
    return %c0_i32, %c0_i32_0 : i32, i32
  }
  func.func @transform_11(%arg0: i32) -> (i32, i32) {
    %c0_i32 = arith.constant 0 : i32
    %c0_i32_0 = arith.constant 0 : i32
    %c0_i32_1 = arith.constant 0 : i32
    return %c0_i32, %c0_i32_0 : i32, i32
  }
  func.func @transform_12(%arg0: i32) -> (i32, i32) {
    %c0_i32 = arith.constant 0 : i32
    %c0_i32_0 = arith.constant 0 : i32
    %c0_i32_1 = arith.constant 0 : i32
    return %c0_i32, %c0_i32_0 : i32, i32
  }
  func.func @transform_13(%arg0: i32) -> (i32, i32) {
    %c0_i32 = arith.constant 0 : i32
    %c0_i32_0 = arith.constant 0 : i32
    %c0_i32_1 = arith.constant 0 : i32
    return %c0_i32, %c0_i32_0 : i32, i32
  }
  func.func @transform_14(%arg0: i32) -> (i32, i32) {
    %c0_i32 = arith.constant 0 : i32
    %c0_i32_0 = arith.constant 0 : i32
    return %arg0, %c0_i32 : i32, i32
  }
}

</mosaic_0001>

<bundles_post_ra>
// kernel: tpu_custom_call.1
= control target key start
LH: loop header
LB: loop body
LE: loop exit
PB: predicated region body
PF: predicated region fallthrough
CT: control target
= control target key end

     0   :  { %s1168_s0 = inlined_call_operand.vmem [shape: bf16[16,192], index: 0, kind: input, shape index: {}]   ;;  %s1169_s1 = inlined_call_operand.vmem [shape: bf16[192,32], index: 1, kind: input, shape index: {}]   ;;  %s1170_s2 = inlined_call_operand.vmem [shape: f32[16,32], index: 2, kind: input, shape index: {}]   ;;  %s1171_s3 = inlined_call_operand.vmem [shape: f32[8,32], index: 3, kind: input, shape index: {}]   ;;  %s1172_s4 = inlined_call_operand.vmem [shape: bf16[32,96], index: 4, kind: input, shape index: {}]   ;;  %s1173_s5 = inlined_call_operand.vmem [shape: f32[1,96], index: 5, kind: input, shape index: {}]   ;;  %s1174_s6 = inlined_call_operand.vmem [shape: bf16[32,32], index: 6, kind: input, shape index: {}]   ;;  %s1175_s7 = inlined_call_operand.vmem [shape: bf16[32,64], index: 7, kind: input, shape index: {}]   ;;  %s1176_s8 = inlined_call_operand.vmem [shape: f32[1,64], index: 8, kind: input, shape index: {}]   ;;  %s1177_s9 = inlined_call_operand.vmem [shape: bf16[64,32], index: 9, kind: input, shape index: {}]   ;;  %s1178_s10 = inlined_call_operand.vmem [shape: bf16[32,64], index: 10, kind: input, shape index: {}]   ;;  %s1179_s11 = inlined_call_operand.vmem [shape: f32[1,64], index: 11, kind: input, shape index: {}]   ;;  %s1180_s12 = inlined_call_operand.vmem [shape: bf16[4,16], index: 12, kind: input, shape index: {}]   ;;  %s1181_s13 = inlined_call_operand.vmem [shape: f32[16,16], index: 13, kind: input, shape index: {}]   ;;  %s1182_s14 = inlined_call_operand.hbm [shape: bf16[4,64], index: 14, kind: output, shape index: {}]  }
   0x1   :  { %v810_v0 = vld [vmem:[%s1169_s1 + $0x38] sm:$0xff]  ;;  %v809_v2 = vld [vmem:[%s1169_s1 + $0x30] sm:$0xff]  ;;  %v808_v4 = vld [vmem:[%s1169_s1 + $0x28] sm:$0xff] }
   0x2   :  { %v814_v1 = vld [vmem:[%s1169_s1 + $0x58] sm:$0xff]  ;;  %162 = vmatpush.bf16.msra.mxu0 %v810_v0  ;;  %v813_v3 = vld [vmem:[%s1169_s1 + $0x50] sm:$0xff]  ;;  %v812_v5 = vld [vmem:[%s1169_s1 + $0x48] sm:$0xff] }
   0x3   :  { %180 = vmatpush.bf16.msra.mxu1 %v814_v1 }
   0x6   :  { %163 = vmatpush.bf16.msra.mxu0 %v809_v2 }
   0x7   :  { %181 = vmatpush.bf16.msra.mxu1 %v813_v3 }
   0x8   :  { %19 = vsyncpa [#allocation3], 0  ;;  %v807_v6 = vld [vmem:[%s1169_s1 + $0x20] sm:$0xff]  ;;  %v692_v9 = vld [vmem:[%s1168_s0 + $0x8] sm:$0xf0]  ;;  %vm158_vm0 = vcmask 523264  }
   0x9   :  { %v811_v7 = vld [vmem:[%s1169_s1 + $0x40] sm:$0xff]  ;;  %v806_v10 = vld [vmem:[%s1169_s1 + $0x18] sm:$0xff]  ;;  %v805_v12 = vld [vmem:[%s1169_s1 + $0x10] sm:$0xff]  ;;  %vm192_vm1 = vcmask 261120   ;;  %v894_v30 = vmov 32.0   ;;  %s895_s23 = smov 96  }
   0xa   :  { %164 = vmatpush.bf16.msra.mxu0 %v808_v4  ;;  %v801_v8 = vld [vmem:[%s1168_s0 + $0x4] sm:$0xf]  ;;  %v804_v13 = vld [vmem:[%s1169_s1 + $0x8] sm:$0xff]  ;;  %v690_v15 = vld [vmem:[%s1168_s0] sm:$0xf]  ;;  %842 = vrcp.f32 %v894_v30  ;;  %vm318_vm9 = vcmask 130048  }
   0xb   :  { %182 = vmatpush.bf16.msra.mxu1 %v812_v5  ;;  %v695_v11 = vor.u32 %v801_v8, %v692_v9  ;;  %v803_v14 = vld [vmem:[%s1169_s1] sm:$0xff]  ;;  %v802_v16 = vld [vmem:[%s1168_s0 + $0x4] sm:$0xf0]  ;;  %s897_s17 = smov [#allocation2]   ;;  %s679_s19 = sshll.u32 %s1182_s14, 4  ;;  %s680_s19 = int_to_ptr.hbm [resolvable:$true] %s679_s19 }
   0xc   :  { %v691_v17 = vor.u32 %v802_v16, %v690_v15  ;;  %v75_v18 = vld [vmem:[%s1170_s2] sm:$0xff]  ;;  %v76_v24 = vld [vmem:[%s1170_s2 + $0x8] sm:$0xff] }
   0xd   :  { %v816_v47 = vld [vmem:[%s1172_s4 + $0x8] sm:$0xff]  ;;  %v815_v49 = vld [vmem:[%s1172_s4] sm:$0xff]  ;;  %s677_s4 = sshll.u32 %s897_s17, 4  ;;  %s678_s4 = int_to_ptr.vmem [resolvable:$true] %s677_s4 }
   0xe   :  { %165 = vmatpush.bf16.msra.mxu0 %v807_v6  ;;  %280 = vmatpush.bf16.msra.mxu2 %v816_v47  ;;  %v831_v4 = vld [vmem:[%s1171_s3] ss:$0 sm:$0xff]  ;;  %v832_v9 = vld [vmem:[%s1171_s3 + $0x1] ss:$0 sm:$0xff]  ;;  %v315_v30 = vld [vmem:[%s1181_s13 + $0x8] sm:$0xff] }
   0xf   :  { %183 = vmatpush.bf16.msra.mxu1 %v811_v7  ;;  %v833_v15 = vld [vmem:[%s1173_s5] ss:$0 sm:$0xff] }
  0x10   :  { %v843_v31 = vpop.eup %842 }
  0x11   :  { %v200_v32 = vmul.f32 32.0, %v843_v31  ;;  %vm204_vm2 = vweird.f32 %v843_v31 }
  0x12   :  { %166 = vmatpush.bf16.msra.mxu0 %v806_v10  ;;  %744 = vmatmul.msk.bf16.vlgmr.msra.gmra.mxu1 %vm158_vm0, %v695_v11 }
  0x13   :  { %v201_v33 = vsub.f32 1.0, %v200_v32  ;;  %281 = vmatpush.bf16.msra.mxu2 %v815_v49 }
  0x15   :  { %v202_v34 = vmul.f32 %v843_v31, %v201_v33 }
  0x16   :  { %167 = vmatpush.bf16.msra.mxu0 %v805_v12 }
  0x17   :  { %v203_v35 = vadd.f32 %v843_v31, %v202_v34 }
  0x19   :  { %v1036_v36 = vsel %vm204_vm2, %v843_v31, %v203_v35 }
  0x1a   :  { %168 = vmatpush.bf16.msra.mxu0 %v804_v13 }
  0x1e   :  { %169 = vmatpush.bf16.msra.mxu0 %v803_v14 }
  0x21   :  { %170 = vmatmul.bf16.vlgmr.msra.gmra.mxu0 %v691_v17 }
  0x8f   :  { %v185_v19 = vpop.f32.mrf.mxu1 }
  0x97   :  { %v187_v27 = vpop.f32.mrf.mxu1 }
  0x9e   :  { %v171_v20 = vpop.f32.mrf.mxu0 }
  0x9f   :  { %v172_v21 = vadd.f32 %v171_v20, %v75_v18 }
  0xa1   :  { %v1025_v22 = vadd.f32 %v185_v19, %v172_v21 }
  0xa3   :  { %v193_v23 = vsel %vm192_vm1, %v1025_v22, 0.0 }
  0xa4   :  { %194 = vadd.xlane.f32.xlu0 %v193_v23 }
  0xa6   :  { %v173_v25 = vpop.f32.mrf.mxu0 }
  0xa7   :  { %v174_v26 = vadd.f32 %v173_v25, %v76_v24  ;;  %v314_v24 = vld [vmem:[%s1181_s13] sm:$0xff]  ;;  %s896_s13 = smov 64  }
  0xa9   :  { %v1032_v28 = vadd.f32 %v187_v27, %v174_v26 }
  0xab   :  { %v196_v29 = vsel %vm192_vm1, %v1032_v28, 0.0 }
  0xac   :  { %197 = vadd.xlane.f32.xlu0 %v196_v29 }
 0x117   :  { %v195_v37 = vpop.xlane.xlu0 %194 }
 0x118   :  { %v206_v38 = vmul.f32 %v1036_v36, %v195_v37 }
 0x11a   :  { %v208_v39 = vsub.f32 %v1025_v22, %v206_v38 }
 0x11c   :  { %v210_v40 = vmul.f32 %v208_v39, %v208_v39 }
 0x11e   :  { %v212_v41 = vsel %vm192_vm1, %v210_v40, 0.0 }
 0x11f   :  { %213 = vadd.xlane.f32.xlu1 %v212_v41  ;;  %v198_v42 = vpop.xlane.xlu0 %197 }
 0x120   :  { %v207_v43 = vmul.f32 %v1036_v36, %v198_v42 }
 0x122   :  { %v209_v44 = vsub.f32 %v1032_v28, %v207_v43 }
 0x124   :  { %v211_v45 = vmul.f32 %v209_v44, %v209_v44 }
 0x126   :  { %v215_v46 = vsel %vm192_vm1, %v211_v45, 0.0 }
 0x127   :  { %216 = vadd.xlane.f32.xlu1 %v215_v46 }
 0x192   :  { %v214_v48 = vpop.xlane.xlu1 %213 }
 0x193   :  { %v218_v50 = vmul.f32 %v214_v48, %v1036_v36 }
 0x195   :  { %v220_v51 = vadd.f32 1e-05, %v218_v50 }
 0x197   :  { %844 = vrsqrt.f32 %v220_v51  ;;  %vm228_vm4 = vweird.f32 %v220_v51 }
 0x19a   :  { %v217_v52 = vpop.xlane.xlu1 %216 }
 0x19b   :  { %v219_v53 = vmul.f32 %v217_v52, %v1036_v36 }
 0x19d   :  { %v845_v54 = vpop.eup %844  ;;  %v221_v55 = vadd.f32 1e-05, %v219_v53  ;;  %v818_v53 = vld [vmem:[%s1174_s6 + $0x8] sm:$0xff] }
 0x19e   :  { %v223_v56 = vmul.f32 %v845_v54, %v220_v51  ;;  %vm229_vm3 = vweird.f32 %v845_v54 }
 0x19f   :  { %846 = vrsqrt.f32 %v221_v55  ;;  %vm230_vm5 = vmor %vm228_vm4, %vm229_vm3  ;;  %vm238_vm7 = vweird.f32 %v221_v55 }
 0x1a0   :  { %v224_v57 = vmul.f32 %v845_v54, %v223_v56 }
 0x1a2   :  { %v225_v58 = vmul.f32 0.5, %v224_v57 }
 0x1a4   :  { %v226_v59 = vsub.f32 1.5, %v225_v58  ;;  %v834_v58 = vld [vmem:[%s1171_s3 + $0x6] ss:$0 sm:$0xff] }
 0x1a5   :  { %v847_v60 = vpop.eup %846 }
 0x1a6   :  { %v227_v61 = vmul.f32 %v845_v54, %v226_v59  ;;  %v233_v62 = vmul.f32 %v847_v60, %v221_v55  ;;  %vm239_vm6 = vweird.f32 %v847_v60 }
 0x1a7   :  { %vm240_vm8 = vmor %vm238_vm7, %vm239_vm6  ;;  %vm670_vm7 = vcmask 517120  }
 0x1a8   :  { %v234_v63 = vmul.f32 %v847_v60, %v233_v62  ;;  %v231_v0 = vsel %vm230_vm5, %v845_v54, %v227_v61  ;;  %v817_v54 = vld [vmem:[%s1174_s6] sm:$0xff] }
 0x1a9   :  { %v242_v3 = vmul.f32 %v231_v0, %v208_v39 }
 0x1aa   :  { %v235_v1 = vmul.f32 0.5, %v234_v63 }
 0x1ab   :  { %v245_v8 = vmul.f32 %v831_v4, %v242_v3 }
 0x1ac   :  { %v236_v2 = vsub.f32 1.5, %v235_v1 }
 0x1ad   :  { %v248_v11 = vadd.f32 %v832_v9, %v245_v8 }
 0x1ae   :  { %v237_v5 = vmul.f32 %v847_v60, %v236_v2 }
 0x1b0   :  { %v241_v6 = vsel %vm240_vm8, %v847_v60, %v237_v5 }
 0x1b1   :  { %v243_v7 = vmul.f32 %v241_v6, %v209_v44 }
 0x1b3   :  { %v246_v10 = vmul.f32 %v831_v4, %v243_v7 }
 0x1b5   :  { %v249_v12 = vadd.f32 %v832_v9, %v246_v10 }
 0x1b7   :  { %v250_v13 = vpack.c.bf16 %v249_v12, %v248_v11  ;;  %v820_v11 = vld [vmem:[%s1175_s7 + $0x8] sm:$0xff] }
 0x1b8   :  { %482 = vmatpush.bf16.msrb.mxu1 %v820_v11 }
 0x1b9   :  { %753 = vmatmul.msk.bf16.vlgmr.msra.gmra.mxu2 %vm192_vm1, %v250_v13  ;;  %v819_v13 = vld [vmem:[%s1175_s7] sm:$0xff] }
 0x1bc   :  { %483 = vmatpush.bf16.msrb.mxu1 %v819_v13 }
 0x23c   :  { %v283_v14 = vpop.f32.mrf.mxu2 }
 0x23d   :  { %v284_v17 = vadd.f32 %v833_v15, %v283_v14 }
 0x244   :  { %v285_v16 = vpop.f32.mrf.mxu2 }
 0x245   :  { %v286_v18 = vadd.f32 %v833_v15, %v285_v16 }
 0x247   :  { %v288_v19 = vpack.c.bf16 %v286_v18, %v284_v17 }
 0x249   :  { %290 = vrot.lane.b32.xlu2 %v288_v19, %s895_s23 }
 0x2a3   :  { %v291_v20 = vpop.permute.xlu2 %290 }
 0x2a4   :  { %v296_v21 = vsel %vm192_vm1, %v291_v20, 0 }
 0x2a5   :  { %305 = vmatpush.bf16.xpose.msra.mxu3 %v296_v21 }
 0x2ac   :  { %754 = vmatmul.msk.bf16.vlgmr.msra.gmra.mxu3 %vm192_vm1, %v288_v19 }
 0x2ad   :  { %390 = vmatpush.bf16.msrb.mxu3 %v818_v53 }
 0x2b1   :  { %391 = vmatpush.bf16.msrb.mxu3 %v817_v54 }
 0x32f   :  { %v307_v23 = vpop.f32.mrf.mxu3 }
 0x330   :  { %v312_v25 = vmul.f32 0.17677669, %v307_v23 }
 0x332   :  { %v316_v26 = vadd.f32 %v314_v24, %v312_v25 }
 0x334   :  { %v319_v27 = vsel %vm318_vm9, %v316_v26, -inf }
 0x335   :  { %320 = vmax.xlane.f32.xlu2 %v319_v27 }
 0x337   :  { %v309_v29 = vpop.f32.mrf.mxu3 }
 0x338   :  { %v313_v31 = vmul.f32 0.17677669, %v309_v29 }
 0x33a   :  { %v317_v32 = vadd.f32 %v315_v30, %v313_v31 }
 0x33c   :  { %v322_v33 = vsel %vm318_vm9, %v317_v32, -inf }
 0x33d   :  { %323 = vmax.xlane.f32.xlu0 %v322_v33 }
 0x3a8   :  { %v321_v34 = vpop.xlane.xlu2 %320 }
 0x3a9   :  { %v325_v35 = vsub.f32 %v316_v26, %v321_v34  ;;  %v835_v34 = vld [vmem:[%s1171_s3 + $0x2] ss:$0 sm:$0xff] }
 0x3ab   :  { %v327_v37 = vmul.f32 1.442695, %v325_v35 }
 0x3ad   :  { %848 = vpow2.f32 %v327_v37 }
 0x3b0   :  { %v324_v38 = vpop.xlane.xlu0 %323 }
 0x3b1   :  { %v326_v39 = vsub.f32 %v317_v32, %v324_v38 }
 0x3b3   :  { %v849_v40 = vpop.eup %848  ;;  %v329_v41 = vmul.f32 1.442695, %v326_v39 }
 0x3b4   :  { %v331_v42 = vsel %vm318_vm9, %v849_v40, 0.0 }
 0x3b5   :  { %850 = vpow2.f32 %v329_v41  ;;  %332 = vadd.xlane.f32.xlu1 %v331_v42 }
 0x3bb   :  { %v851_v43 = vpop.eup %850 }
 0x3bc   :  { %v334_v44 = vsel %vm318_vm9, %v851_v43, 0.0 }
 0x3bd   :  { %335 = vadd.xlane.f32.xlu0 %v334_v44 }
 0x3ce   :  { %342 = vrot.lane.b32.xlu1 %v288_v19, %s896_s13 }
 0x428   :  { %v333_v46 = vpop.xlane.xlu1 %332 }
 0x430   :  { %v336_v45 = vpop.xlane.xlu0 %335 }
 0x431   :  { %852 = vrcp.f32 %v336_v45  ;;  %v824_v45 = vld [vmem:[%s1177_s9 + $0x18] sm:$0xff] }
 0x432   :  { %854 = vrcp.f32 %v333_v46  ;;  %v823_v46 = vld [vmem:[%s1177_s9 + $0x10] sm:$0xff] }
 0x437   :  { %v853_v47 = vpop.eup %852 }
 0x438   :  { %v855_v48 = vpop.eup %854  ;;  %v340_v49 = vmul.f32 %v853_v47, %v851_v43  ;;  %v822_v47 = vld [vmem:[%s1177_s9 + $0x8] sm:$0xff] }
 0x439   :  { %v339_v50 = vmul.f32 %v855_v48, %v849_v40  ;;  %v836_v40 = vld [vmem:[%s1171_s3 + $0x3] ss:$0 sm:$0xff] }
 0x43a   :  { %v821_v48 = vld [vmem:[%s1177_s9] sm:$0xff] }
 0x43b   :  { %v341_v52 = vpack.c.bf16 %v340_v49, %v339_v50  ;;  %v837_v49 = vld [vmem:[%s1176_s8] ss:$0 sm:$0xff] }
 0x440   :  { %v343_v51 = vpop.permute.xlu1 %342 }
 0x441   :  { %355 = vmatpush.bf16.msrb.mxu2 %v343_v51 }
 0x444   :  { %755 = vmatmul.msk.bf16.vlgmr.msrb.gmra.mxu2 %vm318_vm9, %v341_v52 }
 0x445   :  { %550 = vmatpush.bf16.msra.mxu2 %v824_v45 }
 0x449   :  { %551 = vmatpush.bf16.msra.mxu2 %v823_v46 }
 0x44d   :  { %552 = vmatpush.bf16.msra.mxu2 %v822_v47 }
 0x451   :  { %553 = vmatpush.bf16.msra.mxu2 %v821_v48  ;;  %v839_v48 = vld [vmem:[%s1171_s3 + $0x4] ss:$0 sm:$0xff] }
 0x4c7   :  { %v357_v55 = vpop.f32.mrf.mxu2 }
 0x4cf   :  { %v359_v56 = vpop.f32.mrf.mxu2 }
 0x4d0   :  { %v362_v57 = vpack.c.bf16 %v359_v56, %v357_v55 }
 0x4d2   :  { %764 = vmatmul.msk.bf16.vlgmr.msrb.gmra.mxu3 %vm192_vm1, %v362_v57 }
 0x555   :  { %v393_v59 = vpop.f32.mrf.mxu3 }
 0x556   :  { %v394_v60 = vadd.f32 %v834_v58, %v393_v59 }
 0x558   :  { %v1086_v61 = vadd.f32 %v394_v60, %v1025_v22 }
 0x55a   :  { %v402_v62 = vsel %vm192_vm1, %v1086_v61, 0.0 }
 0x55b   :  { %403 = vadd.xlane.f32.xlu0 %v402_v62 }
 0x55d   :  { %v395_v63 = vpop.f32.mrf.mxu3 }
 0x55e   :  { %v396_v0 = vadd.f32 %v834_v58, %v395_v63 }
 0x560   :  { %v1091_v1 = vadd.f32 %v396_v0, %v1032_v28 }
 0x562   :  { %v405_v2 = vsel %vm192_vm1, %v1091_v1, 0.0 }
 0x563   :  { %406 = vadd.xlane.f32.xlu0 %v405_v2 }
 0x5ce   :  { %v404_v3 = vpop.xlane.xlu0 %403 }
 0x5cf   :  { %v408_v4 = vmul.f32 %v404_v3, %v1036_v36 }
 0x5d1   :  { %v410_v5 = vsub.f32 %v1086_v61, %v408_v4 }
 0x5d3   :  { %v412_v22 = vmul.f32 %v410_v5, %v410_v5 }
 0x5d5   :  { %v414_v6 = vsel %vm192_vm1, %v412_v22, 0.0 }
 0x5d6   :  { %415 = vadd.xlane.f32.xlu0 %v414_v6  ;;  %v407_v7 = vpop.xlane.xlu0 %406 }
 0x5d7   :  { %v409_v8 = vmul.f32 %v407_v7, %v1036_v36 }
 0x5d9   :  { %v411_v9 = vsub.f32 %v1091_v1, %v409_v8 }
 0x5db   :  { %v413_v28 = vmul.f32 %v411_v9, %v411_v9 }
 0x5dd   :  { %v417_v10 = vsel %vm192_vm1, %v413_v28, 0.0  ;;  %v838_v28 = vld [vmem:[%s1171_s3 + $0x7] ss:$0 sm:$0xff] }
 0x5de   :  { %418 = vadd.xlane.f32.xlu1 %v417_v10 }
 0x649   :  { %v416_v12 = vpop.xlane.xlu0 %415 }
 0x64a   :  { %v420_v14 = vmul.f32 %v416_v12, %v1036_v36 }
 0x64c   :  { %v422_v15 = vadd.f32 1e-05, %v420_v14 }
 0x64e   :  { %856 = vrsqrt.f32 %v422_v15  ;;  %vm430_vm11 = vweird.f32 %v422_v15 }
 0x651   :  { %v419_v16 = vpop.xlane.xlu1 %418 }
 0x652   :  { %v421_v17 = vmul.f32 %v419_v16, %v1036_v36 }
 0x654   :  { %v857_v18 = vpop.eup %856  ;;  %v423_v19 = vadd.f32 1e-05, %v421_v17 }
 0x655   :  { %v425_v20 = vmul.f32 %v857_v18, %v422_v15  ;;  %vm431_vm10 = vweird.f32 %v857_v18 }
 0x656   :  { %858 = vrsqrt.f32 %v423_v19  ;;  %vm432_vm12 = vmor %vm430_vm11, %vm431_vm10  ;;  %vm440_vm14 = vweird.f32 %v423_v19 }
 0x657   :  { %v426_v21 = vmul.f32 %v857_v18, %v425_v20 }
 0x659   :  { %v427_v23 = vmul.f32 0.5, %v426_v21 }
 0x65b   :  { %v428_v24 = vsub.f32 1.5, %v427_v23 }
 0x65c   :  { %v859_v25 = vpop.eup %858 }
 0x65d   :  { %v429_v26 = vmul.f32 %v857_v18, %v428_v24  ;;  %v435_v27 = vmul.f32 %v859_v25, %v423_v19  ;;  %vm441_vm13 = vweird.f32 %v859_v25 }
 0x65e   :  { %vm442_vm15 = vmor %vm440_vm14, %vm441_vm13 }
 0x65f   :  { %v436_v29 = vmul.f32 %v859_v25, %v435_v27  ;;  %v433_v30 = vsel %vm432_vm12, %v857_v18, %v429_v26 }
 0x660   :  { %v444_v33 = vmul.f32 %v433_v30, %v410_v5 }
 0x661   :  { %v437_v31 = vmul.f32 0.5, %v436_v29 }
 0x662   :  { %v447_v39 = vmul.f32 %v835_v34, %v444_v33  ;;  %v826_v33 = vld [vmem:[%s1178_s10 + $0x8] sm:$0xff] }
 0x663   :  { %v438_v32 = vsub.f32 1.5, %v437_v31  ;;  %662 = vmatpush.bf16.msrb.mxu0 %v826_v33 }
 0x664   :  { %v450_v42 = vadd.f32 %v836_v40, %v447_v39 }
 0x665   :  { %v439_v35 = vmul.f32 %v859_v25, %v438_v32 }
 0x667   :  { %v443_v37 = vsel %vm442_vm15, %v859_v25, %v439_v35 }
 0x668   :  { %v445_v38 = vmul.f32 %v443_v37, %v411_v9 }
 0x66a   :  { %v448_v41 = vmul.f32 %v835_v34, %v445_v38 }
 0x66c   :  { %v451_v43 = vadd.f32 %v836_v40, %v448_v41 }
 0x66e   :  { %v452_v44 = vpack.c.bf16 %v451_v43, %v450_v42 }
 0x670   :  { %773 = vmatmul.msk.bf16.vlgmr.msrb.gmra.mxu1 %vm192_vm1, %v452_v44 }
 0x6ed   :  { %v485_v50 = vpop.f32.mrf.mxu1 }
 0x6ee   :  { %v486_v51 = vadd.f32 %v837_v49, %v485_v50 }
 0x6f0   :  { %v492_v52 = vmul.f32 0.044715, %v486_v51  ;;  %v490_v5 = vmul.f32 0.5, %v486_v51 }
 0x6f2   :  { %v494_v53 = vmul.f32 %v492_v52, %v486_v51 }
 0x6f4   :  { %v496_v54 = vmul.f32 %v494_v53, %v486_v51  ;;  %v840_v53 = vld [vmem:[%s1171_s3 + $0x5] ss:$0 sm:$0xff] }
 0x6f5   :  { %v487_v55 = vpop.f32.mrf.mxu1 }
 0x6f6   :  { %v498_v56 = vadd.f32 %v496_v54, %v486_v51  ;;  %v488_v57 = vadd.f32 %v837_v49, %v487_v55 }
 0x6f8   :  { %v493_v58 = vmul.f32 0.044715, %v488_v57  ;;  %v500_v59 = vmul.f32 0.7978846, %v498_v56  ;;  %v491_v22 = vmul.f32 0.5, %v488_v57 }
 0x6fa   :  { %v495_v60 = vmul.f32 %v493_v58, %v488_v57  ;;  %860 = vtanh.f32 %v500_v59  ;;  %v614_v58 = vld [vmem:[%s1180_s12] sm:$0x3] }
 0x6fb   :  { %v825_v59 = vld [vmem:[%s1178_s10] sm:$0xff] }
 0x6fc   :  { %v497_v62 = vmul.f32 %v495_v60, %v488_v57  ;;  %663 = vmatpush.bf16.msrb.mxu0 %v825_v59 }
 0x6fe   :  { %v499_v63 = vadd.f32 %v497_v62, %v488_v57 }
 0x700   :  { %v501_v0 = vmul.f32 0.7978846, %v499_v63  ;;  %v861_v2 = vpop.eup %860 }
 0x701   :  { %v504_v3 = vadd.f32 1.0, %v861_v2 }
 0x702   :  { %862 = vtanh.f32 %v501_v0  ;;  %v841_v0 = vld [vmem:[%s1179_s11] ss:$0 sm:$0xff] }
 0x703   :  { %v506_v7 = vmul.f32 %v504_v3, %v490_v5 }
 0x708   :  { %v863_v4 = vpop.eup %862 }
 0x709   :  { %v505_v6 = vadd.f32 1.0, %v863_v4 }
 0x70b   :  { %v507_v8 = vmul.f32 %v505_v6, %v491_v22 }
 0x70d   :  { %v508_v9 = vpack.c.bf16 %v507_v8, %v506_v7 }
 0x70f   :  { %790 = vmatmul.msk.bf16.vlgmr.msra.gmra.mxu2 %vm158_vm0, %v508_v9 }
 0x792   :  { %v555_v10 = vpop.f32.mrf.mxu2 }
 0x793   :  { %v556_v11 = vadd.f32 %v838_v28, %v555_v10 }
 0x795   :  { %v560_v12 = vadd.f32 %v556_v11, %v1086_v61 }
 0x797   :  { %v564_v13 = vsel %vm192_vm1, %v560_v12, 0.0 }
 0x798   :  { %565 = vadd.xlane.f32.xlu2 %v564_v13 }
 0x79a   :  { %v557_v14 = vpop.f32.mrf.mxu2 }
 0x79b   :  { %v558_v15 = vadd.f32 %v838_v28, %v557_v14 }
 0x79d   :  { %v561_v16 = vadd.f32 %v558_v15, %v1091_v1 }
 0x79f   :  { %v567_v17 = vsel %vm192_vm1, %v561_v16, 0.0 }
 0x7a0   :  { %568 = vadd.xlane.f32.xlu0 %v567_v17 }
 0x80b   :  { %v566_v18 = vpop.xlane.xlu2 %565 }
 0x80c   :  { %v570_v19 = vmul.f32 %v566_v18, %v1036_v36 }
 0x80e   :  { %v572_v20 = vsub.f32 %v560_v12, %v570_v19 }
 0x810   :  { %v574_v21 = vmul.f32 %v572_v20, %v572_v20 }
 0x812   :  { %v576_v23 = vsel %vm192_vm1, %v574_v21, 0.0 }
 0x813   :  { %v569_v24 = vpop.xlane.xlu0 %568  ;;  %577 = vadd.xlane.f32.xlu2 %v576_v23 }
 0x814   :  { %v571_v61 = vmul.f32 %v569_v24, %v1036_v36 }
 0x816   :  { %v573_v25 = vsub.f32 %v561_v16, %v571_v61 }
 0x818   :  { %v575_v26 = vmul.f32 %v573_v25, %v573_v25 }
 0x81a   :  { %v579_v27 = vsel %vm192_vm1, %v575_v26, 0.0 }
 0x81b   :  { %580 = vadd.xlane.f32.xlu0 %v579_v27 }
 0x886   :  { %v578_v1 = vpop.xlane.xlu2 %577 }
 0x887   :  { %v582_v29 = vmul.f32 %v578_v1, %v1036_v36 }
 0x889   :  { %v584_v30 = vadd.f32 1e-05, %v582_v29 }
 0x88b   :  { %864 = vrsqrt.f32 %v584_v30  ;;  %vm592_vm2 = vweird.f32 %v584_v30 }
 0x88e   :  { %v581_v31 = vpop.xlane.xlu0 %580 }
 0x88f   :  { %v583_v32 = vmul.f32 %v581_v31, %v1036_v36 }
 0x891   :  { %v865_v34 = vpop.eup %864  ;;  %v585_v35 = vadd.f32 1e-05, %v583_v32 }
 0x892   :  { %v587_v37 = vmul.f32 %v865_v34, %v584_v30  ;;  %vm593_vm0 = vweird.f32 %v865_v34 }
 0x893   :  { %866 = vrsqrt.f32 %v585_v35  ;;  %vm594_vm3 = vmor %vm592_vm2, %vm593_vm0  ;;  %vm602_vm5 = vweird.f32 %v585_v35 }
 0x894   :  { %v588_v38 = vmul.f32 %v865_v34, %v587_v37 }
 0x896   :  { %v589_v39 = vmul.f32 0.5, %v588_v38 }
 0x898   :  { %v590_v40 = vsub.f32 1.5, %v589_v39 }
 0x899   :  { %v867_v41 = vpop.eup %866 }
 0x89a   :  { %v591_v42 = vmul.f32 %v865_v34, %v590_v40  ;;  %v597_v43 = vmul.f32 %v867_v41, %v585_v35  ;;  %vm603_vm4 = vweird.f32 %v867_v41 }
 0x89b   :  { %vm604_vm6 = vmor %vm602_vm5, %vm603_vm4 }
 0x89c   :  { %v598_v44 = vmul.f32 %v867_v41, %v597_v43  ;;  %v595_v36 = vsel %vm594_vm3, %v865_v34, %v591_v42 }
 0x89d   :  { %v606_v47 = vmul.f32 %v595_v36, %v572_v20 }
 0x89e   :  { %v599_v45 = vmul.f32 0.5, %v598_v44 }
 0x89f   :  { %v609_v52 = vmul.f32 %v839_v48, %v606_v47 }
 0x8a0   :  { %v600_v46 = vsub.f32 1.5, %v599_v45 }
 0x8a1   :  { %v612_v55 = vadd.f32 %v840_v53, %v609_v52 }
 0x8a2   :  { %v601_v49 = vmul.f32 %v867_v41, %v600_v46 }
 0x8a4   :  { %v605_v50 = vsel %vm604_vm6, %v867_v41, %v601_v49 }
 0x8a5   :  { %v607_v51 = vmul.f32 %v605_v50, %v573_v25 }
 0x8a7   :  { %v610_v54 = vmul.f32 %v839_v48, %v607_v51 }
 0x8a9   :  { %v613_v56 = vadd.f32 %v840_v53, %v610_v54 }
 0x8ab   :  { %v615_v57 = vpack.c.bf16 %v613_v56, %v612_v55 }
 0x8ad   :  { %626 = vmatpush.bf16.msra.mxu3 %v615_v57 }
 0x8b0   :  { %791 = vmatmul.msk.bf16.vlgmr.msra.gmra.mxu3 %vm318_vm9, %v614_v58 }
 0x933   :  { %v628_v60 = vpop.f32.mrf.mxu3 }
 0x934   :  { %v632_v62 = vpack.c.bf16 %v628_v60, %v628_v60 }
 0x936   :  { %800 = vmatmul.msk.bf16.vlgmr.msrb.gmra.mxu0 %vm192_vm1, %v632_v62 }
 0x93b   :  { %v630_v63 = vpop.f32.mrf.mxu3 }
 0x9b3   :  { %v665_v2 = vpop.f32.mrf.mxu0 }
 0x9b4   :  { %v666_v3 = vadd.f32 %v841_v0, %v665_v2 }
 0x9b6   :  { %v669_v4 = vpack.c.bf16 %v666_v3, %v666_v3 }
 0x9b8   :  { %671 = vst.msk [vmem:[#allocation2] sm:$0x3] %vm670_vm7, %v669_v4 }
 0x9b9   :  { %682 = dma.vmem_to_hbm [thread:$0]  %s678_s4, 32, %s680_s19, [#allocation3]  }
 0x9bb   :  { %v667_v5 = vpop.f32.mrf.mxu0 }
 0x9bc   :  { %892 = dma.done.wait [#allocation3], 32  }
 0x9bd   :  { %893 = vsyncadd [#allocation3], 4294967264 }
 0x9be   :  { %687 = vsyncpa [#allocation3], 1 }

</bundles_post_ra>
